<compile_context>
chip_gen: v7x
topology: tpu7x:2x2x1
jax: 0.10.0
libtpu: 0.0.40
codegen_flags: <defaults>
</compile_context>

<pallas_src>
import functools

import jax
import jax.numpy as jnp
import numpy as np
from jax.experimental import pallas as pl
from jax.experimental.pallas import tpu as pltpu


def _layernorm_kernel(alpha_ref, bias_ref, x_ref, o_ref, *, epsilon, n_feat):
    # x_ref / o_ref: (block_rows, n_lanes) VMEM tiles (n_lanes = feature count
    # padded to a multiple of 128).  alpha / bias: (1,) SMEM scalars.
    x = x_ref[...].astype(jnp.float32)

    # Fused single-pass moments.  Zero-padded lanes contribute 0 to both sums,
    # so dividing by the true n_feat gives the exact mean / variance.
    s1 = jnp.sum(x, axis=-1, keepdims=True)
    s2 = jnp.sum(x * x, axis=-1, keepdims=True)
    mean = s1 * jnp.float32(1.0 / n_feat)
    # Unbiased variance (ddof=1), matching torch.Tensor.std default.
    var = jnp.maximum(s2 - s1 * mean, 0.0) * jnp.float32(1.0 / (n_feat - 1))
    std = jnp.sqrt(var)

    denom = std + jnp.float32(epsilon)        # eps added to std (NOT to var)
    # EUP approximate reciprocal + two Newton steps (on a (rows,1) column, so
    # essentially free) recovers full f32 precision while keeping the divide
    # off the per-element VALU path.
    inv = pl.reciprocal(denom, approx=True)
    inv = inv * (2.0 - denom * inv)
    inv = inv * (2.0 - denom * inv)

    alpha = alpha_ref[0].astype(jnp.float32)
    bias = bias_ref[0].astype(jnp.float32)
    scale = alpha * inv                        # (block_rows, 1)
    shift = bias - mean * scale                # (block_rows, 1)
    # out = alpha*(x - mean)/(std + eps) + bias  ==  x*scale + shift
    o_ref[...] = (x * scale + shift).astype(o_ref.dtype)


def _round_up(v, m):
    return (v + m - 1) // m * m


def layer_normalization(x, alpha, bias, epsilon=1e-7, block_rows=None,
                        vmem_limit_bytes=48 * 1024 * 1024):
    """alpha, bias: shape-(1,) arrays (scalar parameters)."""
    orig_shape = x.shape
    n_feat = orig_shape[-1]
    assert n_feat >= 2, "unbiased std (ddof=1) needs at least 2 features"
    rows = int(np.prod(orig_shape[:-1]))
    x2 = x.reshape(rows, n_feat)

    # Lane-dense layout: pad features to a multiple of 128 (zero padding is
    # harmless for the sums; padded output columns are sliced off below).
    n_lanes = _round_up(n_feat, 128)
    if n_lanes != n_feat:
        x2 = jnp.pad(x2, ((0, 0), (0, n_lanes - n_feat)))

    itemsize = jnp.dtype(x2.dtype).itemsize
    if block_rows is None:
        # Double-buffered input + output tiles: 4 * block_rows * n_lanes * B.
        # Budget 32 MiB of the requested scoped VMEM (headroom for f32
        # intermediates / spill) - conservative enough for v7x (64 MiB phys).
        tile_budget = 32 * 1024 * 1024
        max_rows = max(8, (tile_budget // (4 * n_lanes * itemsize)) // 8 * 8)
        block_rows = rows if rows <= max_rows else max_rows
    # block_rows is either == rows (full extent) or a multiple of 8, and
    # n_lanes is a multiple of 128, so the (8, 128) block constraint holds.

    grid = (pl.cdiv(rows, block_rows),)

    kernel = functools.partial(_layernorm_kernel, epsilon=epsilon, n_feat=n_feat)

    out = pl.pallas_call(
        kernel,
        out_shape=jax.ShapeDtypeStruct((rows, n_lanes), x.dtype),
        grid=grid,
        in_specs=[
            pl.BlockSpec(memory_space=pltpu.MemorySpace.SMEM),  # alpha (1,)
            pl.BlockSpec(memory_space=pltpu.MemorySpace.SMEM),  # bias  (1,)
            pl.BlockSpec((block_rows, n_lanes), lambda i: (i, 0)),
        ],
        out_specs=pl.BlockSpec((block_rows, n_lanes), lambda i: (i, 0)),
        compiler_params=pltpu.CompilerParams(
            # Row axis is embarrassingly parallel -> shard grid steps across
            # TensorCores on v7x.
            dimension_semantics=("parallel",),
            vmem_limit_bytes=vmem_limit_bytes,
        ),
    )(alpha, bias, x2)

    if n_lanes != n_feat:
        out = out[:, :n_feat]
    return out.reshape(orig_shape)


def _reference(x, alpha, bias, epsilon=1e-7):
    xf = x.astype(jnp.float32)
    mean = jnp.mean(xf, axis=-1, keepdims=True)
    std = jnp.std(xf, axis=-1, keepdims=True, ddof=1)  # unbiased, like torch
    return (alpha[0] * (xf - mean) / (std + epsilon) + bias[0]).astype(x.dtype)


if __name__ == "__main__":
    key = jax.random.PRNGKey(0)
    batch, seq, hidden = 2, 8, 32
    x = jax.random.normal(key, (batch, seq, hidden), dtype=jnp.float32)

    # Deterministic parameter init, matching nn.Parameter(torch.ones(1)).
    alpha = jnp.ones((1,), dtype=jnp.float32)
    bias = jnp.ones((1,), dtype=jnp.float32)

    out = layer_normalization(x, alpha, bias, epsilon=1e-7)
    out = jax.block_until_ready(out)

    ref = _reference(x, alpha, bias, epsilon=1e-7)
    np.testing.assert_allclose(np.asarray(out), np.asarray(ref), rtol=1e-4, atol=1e-4)

    print("KERNEL_OK")
</pallas_src>

<mosaic_0001>
module attributes {stable_mosaic.version = 11 : i64} {
  func.func @_layernorm_kernel(%arg0: i32, %arg1: memref<1xf32, #tpu.memory_space<smem>>, %arg2: memref<1xf32, #tpu.memory_space<smem>>, %arg3: memref<16x128xf32, #tpu.memory_space<vmem>>, %arg4: memref<16x128xf32, #tpu.memory_space<vmem>>) attributes {dimension_semantics = [#tpu.dimension_semantics<parallel>], iteration_bounds = array<i64: 1>, scalar_prefetch = 0 : i64, scratch_operands = 0 : i64, tpu.core_type = #tpu.core_type<tc>, window_params = [{transform_indices = @transform_0, window_bounds = array<i64: 1>}, {transform_indices = @transform_1, window_bounds = array<i64: 1>}, {transform_indices = @transform_2, window_bounds = array<i64: 16, 128>}, {transform_indices = @transform_3, window_bounds = array<i64: 16, 128>}]} {
    %c0 = arith.constant 0 : index
    %c0_0 = arith.constant 0 : index
    %0 = vector.load %arg3[%c0, %c0_0] : memref<16x128xf32, #tpu.memory_space<vmem>>, vector<16x128xf32>
    %cst = arith.constant dense<0.000000e+00> : vector<16xf32>
    %1 = vector.multi_reduction <add>, %0, %cst [1] : vector<16x128xf32> to vector<16xf32>
    %2 = vector.shape_cast %1 : vector<16xf32> to vector<16x1xf32>
    %3 = arith.mulf %0, %0 : vector<16x128xf32>
    %cst_1 = arith.constant dense<0.000000e+00> : vector<16xf32>
    %4 = vector.multi_reduction <add>, %3, %cst_1 [1] : vector<16x128xf32> to vector<16xf32>
    %5 = vector.shape_cast %4 : vector<16xf32> to vector<16x1xf32>
    %cst_2 = arith.constant 3.125000e-02 : f32
    %6 = vector.broadcast %cst_2 : f32 to vector<16x1xf32>
    %7 = arith.mulf %2, %6 : vector<16x1xf32>
    %8 = arith.mulf %2, %7 : vector<16x1xf32>
    %9 = arith.subf %5, %8 : vector<16x1xf32>
    %cst_3 = arith.constant 0.000000e+00 : f32
    %10 = vector.broadcast %cst_3 : f32 to vector<16x1xf32>
    %11 = arith.maximumf %9, %10 : vector<16x1xf32>
    %cst_4 = arith.constant 0.0322580636 : f32
    %12 = vector.broadcast %cst_4 : f32 to vector<16x1xf32>
    %13 = arith.mulf %11, %12 : vector<16x1xf32>
    %14 = math.sqrt %13 : vector<16x1xf32>
    %cst_5 = arith.constant 1.000000e-07 : f32
    %15 = vector.broadcast %cst_5 : f32 to vector<16x1xf32>
    %16 = arith.addf %14, %15 : vector<16x1xf32>
    %17 = tpu.reciprocal %16 {approx = true} : vector<16x1xf32> -> vector<16x1xf32>
    %18 = arith.mulf %16, %17 : vector<16x1xf32>
    %cst_6 = arith.constant 2.000000e+00 : f32
    %19 = vector.broadcast %cst_6 : f32 to vector<16x1xf32>
    %20 = arith.subf %19, %18 : vector<16x1xf32>
    %21 = arith.mulf %17, %20 : vector<16x1xf32>
    %22 = arith.mulf %16, %21 : vector<16x1xf32>
    %cst_7 = arith.constant 2.000000e+00 : f32
    %23 = vector.broadcast %cst_7 : f32 to vector<16x1xf32>
    %24 = arith.subf %23, %22 : vector<16x1xf32>
    %25 = arith.mulf %21, %24 : vector<16x1xf32>
    %c0_8 = arith.constant 0 : index
    %26 = memref.load %arg1[%c0_8] : memref<1xf32, #tpu.memory_space<smem>>
    %c0_9 = arith.constant 0 : index
    %27 = memref.load %arg2[%c0_9] : memref<1xf32, #tpu.memory_space<smem>>
    %28 = vector.broadcast %26 : f32 to vector<16x1xf32>
    %29 = arith.mulf %28, %25 : vector<16x1xf32>
    %30 = arith.mulf %7, %29 : vector<16x1xf32>
    %31 = vector.broadcast %27 : f32 to vector<16x1xf32>
    %32 = arith.subf %31, %30 : vector<16x1xf32>
    %33 = vector.broadcast %29 : vector<16x1xf32> to vector<16x128xf32>
    %34 = arith.mulf %0, %33 : vector<16x128xf32>
    %35 = vector.broadcast %32 : vector<16x1xf32> to vector<16x128xf32>
    %36 = arith.addf %34, %35 : vector<16x128xf32>
    %c0_10 = arith.constant 0 : index
    %c0_11 = arith.constant 0 : index
    %37 = vector.load %arg4[%c0_10, %c0_11] : memref<16x128xf32, #tpu.memory_space<vmem>>, vector<16x128xf32>
    tpu.vector_store %arg4[%c0_10, %c0_11], %36 {strides = array<i32>} : memref<16x128xf32, #tpu.memory_space<vmem>>, vector<16x128xf32>,
    return
  }
  func.func @transform_0(%arg0: i32) -> i32 {
    %c0_i32 = arith.constant 0 : i32
    %c0_i32_0 = arith.constant 0 : i32
    return %c0_i32 : i32
  }
  func.func @transform_1(%arg0: i32) -> i32 {
    %c0_i32 = arith.constant 0 : i32
    %c0_i32_0 = arith.constant 0 : i32
    return %c0_i32 : i32
  }
  func.func @transform_2(%arg0: i32) -> (i32, i32) {
    %c0_i32 = arith.constant 0 : i32
    %c0_i32_0 = arith.constant 0 : i32
    return %arg0, %c0_i32 : i32, i32
  }
  func.func @transform_3(%arg0: i32) -> (i32, i32) {
    %c0_i32 = arith.constant 0 : i32
    %c0_i32_0 = arith.constant 0 : i32
    return %arg0, %c0_i32 : i32, i32
  }
}

</mosaic_0001>

<bundles_post_ra>
// kernel: tpu_custom_call.1
= control target key start
LH: loop header
LB: loop body
LE: loop exit
PB: predicated region body
PF: predicated region fallthrough
CT: control target
= control target key end

     0   :  { %10 = vsyncpa [#allocation5], 0  ;;  %s242_s0 = inlined_call_operand.<no memory space> [shape: f32[1], index: 0, kind: input, shape index: {}]   ;;  %s243_s1 = inlined_call_operand.<no memory space> [shape: f32[1], index: 1, kind: input, shape index: {}]   ;;  %s244_s2 = inlined_call_operand.hbm [shape: f32[16,128], index: 2, kind: input, shape index: {}]   ;;  %s245_s3 = inlined_call_operand.hbm [shape: f32[16,128], index: 3, kind: output, shape index: {}]  }
   0x1   :  { %11 = vsyncpa [#allocation6], 0  ;;  %s176_s12 = smov [#allocation4]   ;;  %s128_s16 = scalar_lea.hbm %s244_s2, 256 }
   0x2   :  { %s21_s13 = sshll.u32 %s176_s12, 4  ;;  %p129_p0 = scmp.ne.s32.totalorder %s244_s2, %s128_s16  ;;  %s22_s13 = int_to_ptr.vmem [resolvable:$true] %s21_s13 }
   0x3   :  { %p132_p1 = scmp.lt.u32.totalorder %s128_s16, %s244_s2 }
   0x5   :  { %p134_p2 = pnand %p132_p1, %p129_p0 }
   0x7   :  { %137 = shalt.err (!%p134_p2)
}
   0x8   :  { %s138_s21 = scalar_lea.vmem %s22_s13, 256  ;;  %p143_p4 = scmp.lt.s32.totalorder %s22_s13, %s22_s13 }
   0x9   :  { %p139_p3 = scmp.ne.s32.totalorder %s22_s13, %s138_s21  ;;  %p144_p5 = scmp.lt.s32.totalorder %s138_s21, %s138_s21 }
   0xb   :  { %p145_p6 = por %p144_p5, %p143_p4 }
   0xd   :  { %p146_p7 = pnand %p145_p6, %p139_p3 }
   0xf   :  { %149 = shalt.err (!%p146_p7)
}
  0x10   :  { %s177_s22 = smov 128   ;;  %s178_s23 = smov 8  }
  0x11   :  { %27 = dma.hbm_to_vmem [thread:$0]  %s244_s2, 256, %s22_s13, [#allocation5], %s177_s22, %s177_s22, %s178_s23  }
  0x12   :  { %172 = dma.done.wait [#allocation5], 256  }
  0x13   :  { %173 = vsyncadd [#allocation5], 4294967040  ;;  %v31_v0 = vld [vmem:[#allocation4] sm:$0xff]  ;;  %v215_v2 = vld [vmem:[#allocation4 + $0x8] sm:$0xff]  ;;  %v85_v40 = vstv %s242_s0  ;;  %v90_v45 = vstv %s243_s1  ;;  %s179_s29 = smov [#allocation7]  }
  0x14   :  { %33 = vadd.xlane.f32.xlu0 %v31_v0  ;;  %v37_v1 = vmul.f32 %v31_v0, %v31_v0  ;;  %v38_v3 = vmul.f32 %v215_v2, %v215_v2  ;;  %s104_s30 = sshll.u32 %s179_s29, 4  ;;  %s105_s30 = int_to_ptr.vmem [resolvable:$true] %s104_s30 }
  0x15   :  { %s150_s0 = scalar_lea.vmem %s105_s30, 256  ;;  %p155_p9 = scmp.lt.s32.totalorder %s105_s30, %s105_s30 }
  0x16   :  { %39 = vadd.xlane.f32.xlu1 %v37_v1  ;;  %p151_p8 = scmp.ne.s32.totalorder %s105_s30, %s150_s0  ;;  %p156_p10 = scmp.lt.s32.totalorder %s150_s0, %s150_s0 }
  0x18   :  { %35 = vadd.xlane.f32.xlu0 %v215_v2  ;;  %p157_p11 = por %p156_p10, %p155_p9 }
  0x1a   :  { %41 = vadd.xlane.f32.xlu1 %v38_v3  ;;  %p158_p12 = pnand %p157_p11, %p151_p8 }
  0xa1   :  { %v34_v4 = vpop.xlane.xlu0 %33 }
  0xa2   :  { %v43_v5 = vmul.f32 0.03125, %v34_v4 }
  0xa3   :  { %v40_v6 = vpop.xlane.xlu1 %39 }
  0xa4   :  { %v45_v7 = vmul.f32 %v43_v5, %v34_v4 }
  0xa5   :  { %v36_v8 = vpop.xlane.xlu0 %35 }
  0xa6   :  { %v44_v9 = vmul.f32 0.03125, %v36_v8  ;;  %v47_v10 = vsub.f32 %v40_v6, %v45_v7 }
  0xa7   :  { %v42_v11 = vpop.xlane.xlu1 %41 }
  0xa8   :  { %v46_v12 = vmul.f32 %v44_v9, %v36_v8  ;;  %v49_v13 = vmax.f32 %v47_v10, 0.0 }
  0xaa   :  { %v51_v14 = vmul.f32 0.032258064, %v49_v13  ;;  %v48_v15 = vsub.f32 %v42_v11, %v46_v12 }
  0xac   :  { %120 = vrsqrt.f32 %v51_v14  ;;  %v50_v16 = vmax.f32 %v48_v15, 0.0  ;;  %vm55_vm0 = vcmp.eq.f32.partialorder %v51_v14, inf  ;;  %v58_v20 = vand.u32 2147483648, %v51_v14 }
  0xad   :  { %vm57_vm1 = vcmp.eq.f32.partialorder %v51_v14, 0.0 }
  0xae   :  { %v52_v17 = vmul.f32 0.032258064, %v50_v16 }
  0xb0   :  { %122 = vrsqrt.f32 %v52_v17  ;;  %vm62_vm2 = vcmp.eq.f32.partialorder %v52_v17, inf  ;;  %v65_v26 = vand.u32 2147483648, %v52_v17  ;;  %vm64_vm3 = vcmp.eq.f32.partialorder %v52_v17, 0.0 }
  0xb6   :  { %v121_v18 = vpop.eup %120 }
  0xb7   :  { %v54_v19 = vmul.f32 %v121_v18, %v51_v14 }
  0xb9   :  { %v56_v21 = vsel %vm55_vm0, %v51_v14, %v54_v19 }
  0xba   :  { %v59_v22 = vsel %vm57_vm1, %v58_v20, %v56_v21  ;;  %v123_v23 = vpop.eup %122 }
  0xbb   :  { %v67_v24 = vadd.f32 1e-07, %v59_v22  ;;  %v61_v25 = vmul.f32 %v123_v23, %v52_v17 }
  0xbd   :  { %124 = vrcp.f32 %v67_v24  ;;  %v63_v27 = vsel %vm62_vm2, %v52_v17, %v61_v25 }
  0xbe   :  { %v66_v28 = vsel %vm64_vm3, %v65_v26, %v63_v27 }
  0xbf   :  { %v68_v29 = vadd.f32 1e-07, %v66_v28 }
  0xc1   :  { %126 = vrcp.f32 %v68_v29 }
  0xc7   :  { %v125_v30 = vpop.eup %124 }
  0xc8   :  { %v71_v31 = vmul.f32 %v125_v30, %v67_v24 }
  0xca   :  { %v73_v32 = vsub.f32 2.0, %v71_v31 }
  0xcb   :  { %v127_v33 = vpop.eup %126 }
  0xcc   :  { %v75_v34 = vmul.f32 %v125_v30, %v73_v32  ;;  %v72_v35 = vmul.f32 %v127_v33, %v68_v29 }
  0xce   :  { %v77_v36 = vmul.f32 %v75_v34, %v67_v24  ;;  %v74_v37 = vsub.f32 2.0, %v72_v35 }
  0xd0   :  { %v79_v38 = vsub.f32 2.0, %v77_v36  ;;  %v76_v39 = vmul.f32 %v127_v33, %v74_v37 }
  0xd2   :  { %v81_v41 = vmul.f32 %v79_v38, %v75_v34  ;;  %v78_v42 = vmul.f32 %v76_v39, %v68_v29 }
  0xd4   :  { %v86_v43 = vmul.f32 %v85_v40, %v81_v41  ;;  %v80_v44 = vsub.f32 2.0, %v78_v42 }
  0xd6   :  { %v88_v46 = vmul.f32 %v86_v43, %v43_v5  ;;  %v82_v47 = vmul.f32 %v80_v44, %v76_v39  ;;  %v93_v49 = vmul.f32 %v86_v43, %v31_v0 }
  0xd8   :  { %v91_v48 = vsub.f32 %v90_v45, %v88_v46  ;;  %v87_v50 = vmul.f32 %v85_v40, %v82_v47 }
  0xda   :  { %v95_v51 = vadd.f32 %v93_v49, %v91_v48  ;;  %v89_v52 = vmul.f32 %v87_v50, %v44_v9  ;;  %v94_v54 = vmul.f32 %v87_v50, %v215_v2 }
  0xdc   :  { %97 = vst [vmem:[#allocation7] sm:$0xff] %v95_v51  ;;  %v92_v53 = vsub.f32 %v90_v45, %v89_v52 }
  0xde   :  { %v96_v55 = vadd.f32 %v94_v54, %v92_v53 }
  0xe0   :  { %98 = vst [vmem:[#allocation7 + $0x8] sm:$0xff] %v96_v55 }
  0xe1   :  { %161 = shalt.err (!%p158_p12)
}
  0xe2   :  { %s162_s5 = scalar_lea.hbm %s245_s3, 256 }
  0xe3   :  { %p163_p13 = scmp.ne.s32.totalorder %s245_s3, %s162_s5  ;;  %p166_p0 = scmp.lt.u32.totalorder %s162_s5, %s245_s3 }
  0xe5   :  { %p168_p1 = pnand %p166_p0, %p163_p13 }
  0xe7   :  { %171 = shalt.err (!%p168_p1)
}
  0xe8   :  { %110 = dma.vmem_to_hbm [thread:$0]  %s105_s30, 256, %s245_s3, [#allocation6], %s177_s22, %s177_s22, %s178_s23  }
  0xe9   :  { %174 = dma.done.wait [#allocation6], 256  }
  0xea   :  { %175 = vsyncadd [#allocation6], 4294967040 }
  0xeb   :  { %114 = vsyncpa [#allocation5], 1 }
  0xec   :  { %115 = vsyncpa [#allocation6], 1 }

</bundles_post_ra>
